<compile_context>
chip_gen: v6e
topology: v6e:2x2x1
jax: 0.10.0
libtpu: 0.0.40
codegen_flags: <defaults>
</compile_context>

<pallas_src>
import functools
import math

import jax
import jax.numpy as jnp
from jax import lax
from jax.experimental import pallas as pl
from jax.experimental.pallas import tpu as pltpu


def _attn_kernel(*refs, num_heads, head_dim, q_tile, causal):
    """One grid step = (batch element, query tile)."""
    if causal:
        (x_ref, wqkv_ref, bqkv_ref, wout_ref, bout_ref,
         out_ref, k_scr, v_scr, q_scr, ctx_hm, ctx_flat) = refs
        mask_ref = None
    else:
        (x_ref, mask_ref, wqkv_ref, bqkv_ref, wout_ref, bout_ref,
         out_ref, k_scr, v_scr, q_scr, ctx_hm, ctx_flat) = refs

    h = num_heads * head_dim
    s = x_ref.shape[0]
    qi = pl.program_id(1)

    bqkv = bqkv_ref[0]                                  # [3h] f32

    # ---- K/V projection: once per batch element (first query tile) ---------
    @pl.when(qi == 0)
    def _():
        x = x_ref[...]                                  # [s, h] bf16
        k_full = jnp.dot(x, wqkv_ref[:, h:2 * h],
                         preferred_element_type=jnp.float32) + bqkv[h:2 * h]
        v_full = jnp.dot(x, wqkv_ref[:, 2 * h:3 * h],
                         preferred_element_type=jnp.float32) + bqkv[2 * h:3 * h]
        # Scatter into head-major scratch with *static* lane slices.  Each head
        # block then starts at lane 0, so the fori_loop below never needs a
        # dynamic lane-offset slice.  (Small live ranges per iteration.)
        for hd in range(num_heads):
            lo = hd * head_dim
            k_scr[hd] = k_full[:, lo:lo + head_dim].astype(jnp.bfloat16)
            v_scr[hd] = v_full[:, lo:lo + head_dim].astype(jnp.bfloat16)

    # ---- Q projection for this query tile (scale folded into W_q / b_q) ----
    q_start = pl.multiple_of(qi * q_tile, q_tile)
    x_q = x_ref[pl.ds(q_start, q_tile), :]              # [tq, h] bf16
    q_full = jnp.dot(x_q, wqkv_ref[:, 0:h],
                     preferred_element_type=jnp.float32) + bqkv[0:h]
    for hd in range(num_heads):
        lo = hd * head_dim
        q_scr[hd] = q_full[:, lo:lo + head_dim].astype(jnp.bfloat16)

    # ---- Mask, hoisted out of the head loop ---------------------------------
    if causal:
        rows = q_start + lax.broadcasted_iota(jnp.int32, (q_tile, s), 0)
        cols = lax.broadcasted_iota(jnp.int32, (q_tile, s), 1)
        allow = cols <= rows
        mask = None
        neg_bias = None
    else:
        mask = mask_ref[...]                            # [tq, s] f32
        neg_bias = -10000.0 * (1.0 - mask)
        allow = None

    qk_dims = (((1,), (1,)), ((), ()))                  # q_h @ k_h.T, no relayout

    # ---- Per-head attention: fori_loop bounds the [tq, s] live ranges ------
    def head_body(hd, carry):
        q_h = q_scr[hd]                                 # [tq, d] bf16
        k_h = k_scr[hd]                                 # [s,  d] bf16
        v_h = v_scr[hd]                                 # [s,  d] bf16

        scores = lax.dot_general(q_h, k_h, qk_dims,
                                 preferred_element_type=jnp.float32)   # [tq, s]
        if causal:
            # Exact for a binary 0/1 mask:  s*1 - 0  /  s*0 - 10000.
            scores = jnp.where(allow, scores, -10000.0)
        else:
            # General (possibly soft) mask, faithful to the module.
            scores = scores * mask + neg_bias

        # Max-stabilized softmax in f32; reciprocal on the EUP.
        m = jnp.max(scores, axis=-1, keepdims=True)
        p = jnp.exp(scores - m)
        denom = jnp.sum(p, axis=-1, keepdims=True)
        probs = p * pl.reciprocal(denom, approx=True)

        ctx_h = jnp.dot(probs.astype(jnp.bfloat16), v_h,
                        preferred_element_type=jnp.float32)            # [tq, d]
        ctx_hm[hd] = ctx_h.astype(jnp.bfloat16)
        return carry

    lax.fori_loop(0, num_heads, head_body, 0)

    # ---- Repack context lane-dense and run one K = h output projection -----
    for hd in range(num_heads):
        lo = hd * head_dim
        ctx_flat[:, lo:lo + head_dim] = ctx_hm[hd]

    out = jnp.dot(ctx_flat[...], wout_ref[...],
                  preferred_element_type=jnp.float32) + bout_ref[0]
    out_ref[...] = out.astype(out_ref.dtype)


def prepare_gpt2_attention_params(w_qkv, b_qkv, w_out, b_out, num_heads):
    """One-time param prep: fold 1/sqrt(head_dim) into the Q block, cast
    matmul weights to bf16 (halves weight DMA bytes + VMEM residency)."""
    h = w_qkv.shape[0]
    head_dim = h // num_heads
    scale = jnp.float32(1.0 / math.sqrt(head_dim))
    w_qkv = w_qkv.astype(jnp.float32).at[:, :h].multiply(scale)
    b_qkv = b_qkv.astype(jnp.float32).at[:, :h].multiply(scale)
    return (w_qkv.astype(jnp.bfloat16), b_qkv,
            w_out.astype(jnp.bfloat16), b_out.astype(jnp.float32))


def _pick_q_tile(s):
    # v6e/v7x MXU is 256 wide: prefer 256/512 query tiles when they divide s.
    for t in (512, 256, 128, 64, 32, 16, 8):
        if t <= s and s % t == 0:
            return t
    return s


def _vmem_limit_bytes():
    # v5e/v6e: 128 MiB physical VMEM; v7x: 64 MiB.  Use ~75% with a cap.
    try:
        cap = pltpu.get_tpu_info().vmem_capacity_bytes
    except Exception:
        cap = 128 * 1024 * 1024
    return int(min(cap * 3 // 4, 112 * 1024 * 1024))


def gpt2_self_attention(hidden_states, ltor_mask, w_qkv, b_qkv, w_out, b_out,
                        num_heads, *, causal=False, q_tile=None):
    b, s, h = hidden_states.shape
    assert h % num_heads == 0
    head_dim = h // num_heads
    if q_tile is None:
        q_tile = _pick_q_tile(s)
    assert s % q_tile == 0
    nq = s // q_tile

    w_qkv_b, b_qkv_f, w_out_b, b_out_f = prepare_gpt2_attention_params(
        w_qkv, b_qkv, w_out, b_out, num_heads)
    x = hidden_states.astype(jnp.bfloat16)

    # hidden_states block is constant across the q-tile axis -> fetched once
    # per batch element (Pallas does not re-DMA unchanged block indices).
    in_specs = [pl.BlockSpec((None, s, h), lambda bi, qi: (bi, 0, 0))]
    args = [x]
    if not causal:
        m = ltor_mask.astype(jnp.float32)
        if m.shape[0] == 1:   # shared mask: never re-index on batch
            in_specs.append(pl.BlockSpec((None, q_tile, s), lambda bi, qi: (0, qi, 0)))
        else:
            in_specs.append(pl.BlockSpec((None, q_tile, s), lambda bi, qi: (bi, qi, 0)))
        args.append(m)
    in_specs += [
        pl.BlockSpec((h, 3 * h), lambda bi, qi: (0, 0)),   # W_qkv (bf16, shared)
        pl.BlockSpec((1, 3 * h), lambda bi, qi: (0, 0)),   # b_qkv (f32)
        pl.BlockSpec((h, h), lambda bi, qi: (0, 0)),       # W_out (bf16, shared)
        pl.BlockSpec((1, h), lambda bi, qi: (0, 0)),       # b_out (f32)
    ]
    args += [w_qkv_b, b_qkv_f, w_out_b, b_out_f]

    kernel = functools.partial(_attn_kernel, num_heads=num_heads,
                               head_dim=head_dim, q_tile=q_tile, causal=causal)

    return pl.pallas_call(
        kernel,
        out_shape=jax.ShapeDtypeStruct((b, s, h), hidden_states.dtype),
        grid=(b, nq),
        in_specs=in_specs,
        out_specs=pl.BlockSpec((None, q_tile, h), lambda bi, qi: (bi, qi, 0)),
        scratch_shapes=[
            pltpu.VMEM((num_heads, s, head_dim), jnp.bfloat16),       # K, head-major
            pltpu.VMEM((num_heads, s, head_dim), jnp.bfloat16),       # V, head-major
            pltpu.VMEM((num_heads, q_tile, head_dim), jnp.bfloat16),  # Q tile
            pltpu.VMEM((num_heads, q_tile, head_dim), jnp.bfloat16),  # ctx, head-major
            pltpu.VMEM((q_tile, h), jnp.bfloat16),                    # ctx, lane-dense
        ],
        compiler_params=pltpu.CompilerParams(
            # Batch is independent (megacore); q-tile axis reuses the K/V
            # scratch written at qi == 0, so it must stay sequential.
            dimension_semantics=("parallel", "arbitrary"),
            vmem_limit_bytes=_vmem_limit_bytes(),
        ),
    )(*args)


def reference_jax(hidden_states, ltor_mask, w_qkv, b_qkv, w_out, b_out, num_heads):
    """Pure-JAX f32 reference mirroring the PyTorch forward exactly."""
    b, s, h = hidden_states.shape
    hn = h // num_heads
    qkv = hidden_states @ w_qkv + b_qkv[0]
    q, k, v = jnp.split(qkv, 3, axis=-1)

    def t(x):  # [b, s, n*hn] -> [b, n, s, hn]
        return x.reshape(b, s, num_heads, hn).transpose(0, 2, 1, 3)

    q, k, v = t(q), t(k), t(v)
    scores = jnp.einsum("bnqd,bnkd->bnqk", q, k) / math.sqrt(hn)
    mask = ltor_mask[:, None, :, :]
    scores = scores * mask - 10000.0 * (1.0 - mask)
    probs = jax.nn.softmax(scores, axis=-1)
    ctx = jnp.einsum("bnqk,bnkd->bnqd", probs, v)
    ctx = ctx.transpose(0, 2, 1, 3).reshape(b, s, h)
    return ctx @ w_out + b_out[0]


if __name__ == "__main__":
    # Small shapes consistent with the module: b=2, s=16, hidden=32, heads=4.
    # q_tile=8 -> 2 query tiles per batch element, exercising the qi grid axis,
    # the pl.when(qi==0) K/V path, and scratch persistence.
    b, s, h, n_heads = 2, 16, 32, 4

    key = jax.random.PRNGKey(0)
    k1, k2, k3, k4, k5 = jax.random.split(key, 5)

    hidden_states = jax.random.normal(k1, (b, s, h), dtype=jnp.float32)
    w_qkv = jax.random.normal(k2, (h, 3 * h), dtype=jnp.float32) * 0.02
    b_qkv = jax.random.normal(k3, (1, 3 * h), dtype=jnp.float32) * 0.02
    w_out = jax.random.normal(k4, (h, h), dtype=jnp.float32) * 0.02
    b_out = jax.random.normal(k5, (1, h), dtype=jnp.float32) * 0.02

    causal_mask = jnp.tril(jnp.ones((s, s), dtype=jnp.float32))
    ltor_mask = jnp.broadcast_to(causal_mask, (b, s, s))

    ref = reference_jax(hidden_states, ltor_mask, w_qkv, b_qkv, w_out, b_out, n_heads)

    # Path 1: explicit [b, s, s] mask streamed per query tile (general module path).
    out_masked = gpt2_self_attention(hidden_states, ltor_mask, w_qkv, b_qkv,
                                     w_out, b_out, n_heads, q_tile=8)
    out_masked = jax.block_until_ready(out_masked)

    # Path 2: causal mask generated in-kernel (no [s, s] HBM mask traffic).
    out_causal = gpt2_self_attention(hidden_states, None, w_qkv, b_qkv,
                                     w_out, b_out, n_heads, causal=True, q_tile=8)
    out_causal = jax.block_until_ready(out_causal)

    assert out_masked.shape == (b, s, h)
    # bf16 MXU inputs + bf16 K/V/ctx staging + approx reciprocal vs f32 reference.
    assert jnp.allclose(out_masked, ref, rtol=3e-2, atol=3e-3), "masked path mismatch"
    assert jnp.allclose(out_causal, ref, rtol=3e-2, atol=3e-3), "causal path mismatch"

    print("KERNEL_OK")
</pallas_src>

<mosaic_0001>
module attributes {stable_mosaic.version = 11 : i64} {
  func.func @_attn_kernel(%arg0: i32, %arg1: i32, %arg2: memref<1x16x32xbf16, #tpu.memory_space<vmem>>, %arg3: memref<1x8x16xf32, #tpu.memory_space<vmem>>, %arg4: memref<32x96xbf16, #tpu.memory_space<vmem>>, %arg5: memref<1x96xf32, #tpu.memory_space<vmem>>, %arg6: memref<32x32xbf16, #tpu.memory_space<vmem>>, %arg7: memref<1x32xf32, #tpu.memory_space<vmem>>, %arg8: memref<1x8x32xf32, #tpu.memory_space<vmem>>, %arg9: memref<4x16x8xbf16, #tpu.memory_space<vmem>>, %arg10: memref<4x16x8xbf16, #tpu.memory_space<vmem>>, %arg11: memref<4x8x8xbf16, #tpu.memory_space<vmem>>, %arg12: memref<4x8x8xbf16, #tpu.memory_space<vmem>>, %arg13: memref<8x32xbf16, #tpu.memory_space<vmem>>) attributes {dimension_semantics = [#tpu.dimension_semantics<parallel>, #tpu.dimension_semantics<arbitrary>], iteration_bounds = array<i64: 2, 2>, scalar_prefetch = 0 : i64, scratch_operands = 5 : i64, tpu.core_type = #tpu.core_type<tc>, window_params = [{transform_indices = @transform_0, window_bounds = array<i64: 1, 16, 32>}, {transform_indices = @transform_1, window_bounds = array<i64: 1, 8, 16>}, {pipeline_mode = #tpu.pipeline_mode<synchronous>, transform_indices = @transform_2, window_bounds = array<i64: 32, 96>}, {pipeline_mode = #tpu.pipeline_mode<synchronous>, transform_indices = @transform_3, window_bounds = array<i64: 1, 96>}, {pipeline_mode = #tpu.pipeline_mode<synchronous>, transform_indices = @transform_4, window_bounds = array<i64: 32, 32>}, {pipeline_mode = #tpu.pipeline_mode<synchronous>, transform_indices = @transform_5, window_bounds = array<i64: 1, 32>}, {transform_indices = @transform_6, window_bounds = array<i64: 1, 8, 32>}]} {
    %c0 = arith.constant 0 : index
    %c0_0 = arith.constant 0 : index
    %0 = vector.load %arg5[%c0, %c0_0] : memref<1x96xf32, #tpu.memory_space<vmem>>, vector<1x96xf32>
    %1 = vector.shape_cast %0 : vector<1x96xf32> to vector<96xf32>
    %c0_i32 = arith.constant 0 : i32
    %2 = arith.cmpi eq, %arg1, %c0_i32 : i32
    %3 = arith.extui %2 : i1 to i32
    %c0_i32_1 = arith.constant 0 : i32
    %4 = arith.cmpi ne, %3, %c0_i32_1 : i32
    scf.if %4 {
      %c0_49 = arith.constant 0 : index
      %c0_50 = arith.constant 0 : index
      %c0_51 = arith.constant 0 : index
      %66 = vector.load %arg2[%c0_49, %c0_50, %c0_51] : memref<1x16x32xbf16, #tpu.memory_space<vmem>>, vector<1x16x32xbf16>
      %67 = vector.shape_cast %66 : vector<1x16x32xbf16> to vector<16x32xbf16>
      %c0_52 = arith.constant 0 : index
      %c32 = arith.constant 32 : index
      %68 = vector.load %arg4[%c0_52, %c32] : memref<32x96xbf16, #tpu.memory_space<vmem>>, vector<32x32xbf16>
      %cst_53 = arith.constant dense<0.000000e+00> : vector<16x32xf32>
      %69 = tpu.matmul %67, %68, %cst_53 {dimension_numbers = #tpu.dot_dimension_numbers<[1], [0], [0], [1], [0, 0, 1, 1], [], []>} : vector<16x32xbf16>, vector<32x32xbf16>, vector<16x32xf32> -> vector<16x32xf32>
      %70 = vector.extract_strided_slice %1 {offsets = [32], sizes = [32], strides = [1]} : vector<96xf32> to vector<32xf32>
      %71 = vector.shape_cast %70 : vector<32xf32> to vector<1x32xf32>
      %72 = vector.broadcast %71 : vector<1x32xf32> to vector<16x32xf32>
      %73 = arith.addf %69, %72 : vector<16x32xf32>
      %c0_54 = arith.constant 0 : index
      %c64 = arith.constant 64 : index
      %74 = vector.load %arg4[%c0_54, %c64] : memref<32x96xbf16, #tpu.memory_space<vmem>>, vector<32x32xbf16>
      %cst_55 = arith.constant dense<0.000000e+00> : vector<16x32xf32>
      %75 = tpu.matmul %67, %74, %cst_55 {dimension_numbers = #tpu.dot_dimension_numbers<[1], [0], [0], [1], [0, 0, 1, 1], [], []>} : vector<16x32xbf16>, vector<32x32xbf16>, vector<16x32xf32> -> vector<16x32xf32>
      %76 = vector.extract_strided_slice %1 {offsets = [64], sizes = [32], strides = [1]} : vector<96xf32> to vector<32xf32>
      %77 = vector.shape_cast %76 : vector<32xf32> to vector<1x32xf32>
      %78 = vector.broadcast %77 : vector<1x32xf32> to vector<16x32xf32>
      %79 = arith.addf %75, %78 : vector<16x32xf32>
      %80 = vector.extract_strided_slice %73 {offsets = [0, 0], sizes = [16, 8], strides = [1, 1]} : vector<16x32xf32> to vector<16x8xf32>
      %81 = arith.truncf %80 : vector<16x8xf32> to vector<16x8xbf16>
      %c0_56 = arith.constant 0 : index
      %c0_57 = arith.constant 0 : index
      %c0_58 = arith.constant 0 : index
      %82 = vector.load %arg9[%c0_56, %c0_57, %c0_58] : memref<4x16x8xbf16, #tpu.memory_space<vmem>>, vector<1x16x8xbf16>
      %83 = vector.shape_cast %82 : vector<1x16x8xbf16> to vector<16x8xbf16>
      %84 = vector.shape_cast %81 : vector<16x8xbf16> to vector<1x16x8xbf16>
      tpu.vector_store %arg9[%c0_56, %c0_57, %c0_58], %84 {strides = array<i32>} : memref<4x16x8xbf16, #tpu.memory_space<vmem>>, vector<1x16x8xbf16>,
      %85 = vector.extract_strided_slice %79 {offsets = [0, 0], sizes = [16, 8], strides = [1, 1]} : vector<16x32xf32> to vector<16x8xf32>
      %86 = arith.truncf %85 : vector<16x8xf32> to vector<16x8xbf16>
      %c0_59 = arith.constant 0 : index
      %c0_60 = arith.constant 0 : index
      %c0_61 = arith.constant 0 : index
      %87 = vector.load %arg10[%c0_59, %c0_60, %c0_61] : memref<4x16x8xbf16, #tpu.memory_space<vmem>>, vector<1x16x8xbf16>
      %88 = vector.shape_cast %87 : vector<1x16x8xbf16> to vector<16x8xbf16>
      %89 = vector.shape_cast %86 : vector<16x8xbf16> to vector<1x16x8xbf16>
      tpu.vector_store %arg10[%c0_59, %c0_60, %c0_61], %89 {strides = array<i32>} : memref<4x16x8xbf16, #tpu.memory_space<vmem>>, vector<1x16x8xbf16>,
      %90 = vector.extract_strided_slice %73 {offsets = [0, 8], sizes = [16, 8], strides = [1, 1]} : vector<16x32xf32> to vector<16x8xf32>
      %91 = arith.truncf %90 : vector<16x8xf32> to vector<16x8xbf16>
      %c1_62 = arith.constant 1 : index
      %c0_63 = arith.constant 0 : index
      %c0_64 = arith.constant 0 : index
      %92 = vector.load %arg9[%c1_62, %c0_63, %c0_64] : memref<4x16x8xbf16, #tpu.memory_space<vmem>>, vector<1x16x8xbf16>
      %93 = vector.shape_cast %92 : vector<1x16x8xbf16> to vector<16x8xbf16>
      %94 = vector.shape_cast %91 : vector<16x8xbf16> to vector<1x16x8xbf16>
      tpu.vector_store %arg9[%c1_62, %c0_63, %c0_64], %94 {strides = array<i32>} : memref<4x16x8xbf16, #tpu.memory_space<vmem>>, vector<1x16x8xbf16>,
      %95 = vector.extract_strided_slice %79 {offsets = [0, 8], sizes = [16, 8], strides = [1, 1]} : vector<16x32xf32> to vector<16x8xf32>
      %96 = arith.truncf %95 : vector<16x8xf32> to vector<16x8xbf16>
      %c1_65 = arith.constant 1 : index
      %c0_66 = arith.constant 0 : index
      %c0_67 = arith.constant 0 : index
      %97 = vector.load %arg10[%c1_65, %c0_66, %c0_67] : memref<4x16x8xbf16, #tpu.memory_space<vmem>>, vector<1x16x8xbf16>
      %98 = vector.shape_cast %97 : vector<1x16x8xbf16> to vector<16x8xbf16>
      %99 = vector.shape_cast %96 : vector<16x8xbf16> to vector<1x16x8xbf16>
      tpu.vector_store %arg10[%c1_65, %c0_66, %c0_67], %99 {strides = array<i32>} : memref<4x16x8xbf16, #tpu.memory_space<vmem>>, vector<1x16x8xbf16>,
      %100 = vector.extract_strided_slice %73 {offsets = [0, 16], sizes = [16, 8], strides = [1, 1]} : vector<16x32xf32> to vector<16x8xf32>
      %101 = arith.truncf %100 : vector<16x8xf32> to vector<16x8xbf16>
      %c2_68 = arith.constant 2 : index
      %c0_69 = arith.constant 0 : index
      %c0_70 = arith.constant 0 : index
      %102 = vector.load %arg9[%c2_68, %c0_69, %c0_70] : memref<4x16x8xbf16, #tpu.memory_space<vmem>>, vector<1x16x8xbf16>
      %103 = vector.shape_cast %102 : vector<1x16x8xbf16> to vector<16x8xbf16>
      %104 = vector.shape_cast %101 : vector<16x8xbf16> to vector<1x16x8xbf16>
      tpu.vector_store %arg9[%c2_68, %c0_69, %c0_70], %104 {strides = array<i32>} : memref<4x16x8xbf16, #tpu.memory_space<vmem>>, vector<1x16x8xbf16>,
      %105 = vector.extract_strided_slice %79 {offsets = [0, 16], sizes = [16, 8], strides = [1, 1]} : vector<16x32xf32> to vector<16x8xf32>
      %106 = arith.truncf %105 : vector<16x8xf32> to vector<16x8xbf16>
      %c2_71 = arith.constant 2 : index
      %c0_72 = arith.constant 0 : index
      %c0_73 = arith.constant 0 : index
      %107 = vector.load %arg10[%c2_71, %c0_72, %c0_73] : memref<4x16x8xbf16, #tpu.memory_space<vmem>>, vector<1x16x8xbf16>
      %108 = vector.shape_cast %107 : vector<1x16x8xbf16> to vector<16x8xbf16>
      %109 = vector.shape_cast %106 : vector<16x8xbf16> to vector<1x16x8xbf16>
      tpu.vector_store %arg10[%c2_71, %c0_72, %c0_73], %109 {strides = array<i32>} : memref<4x16x8xbf16, #tpu.memory_space<vmem>>, vector<1x16x8xbf16>,
      %110 = vector.extract_strided_slice %73 {offsets = [0, 24], sizes = [16, 8], strides = [1, 1]} : vector<16x32xf32> to vector<16x8xf32>
      %111 = arith.truncf %110 : vector<16x8xf32> to vector<16x8xbf16>
      %c3_74 = arith.constant 3 : index
      %c0_75 = arith.constant 0 : index
      %c0_76 = arith.constant 0 : index
      %112 = vector.load %arg9[%c3_74, %c0_75, %c0_76] : memref<4x16x8xbf16, #tpu.memory_space<vmem>>, vector<1x16x8xbf16>
      %113 = vector.shape_cast %112 : vector<1x16x8xbf16> to vector<16x8xbf16>
      %114 = vector.shape_cast %111 : vector<16x8xbf16> to vector<1x16x8xbf16>
      tpu.vector_store %arg9[%c3_74, %c0_75, %c0_76], %114 {strides = array<i32>} : memref<4x16x8xbf16, #tpu.memory_space<vmem>>, vector<1x16x8xbf16>,
      %115 = vector.extract_strided_slice %79 {offsets = [0, 24], sizes = [16, 8], strides = [1, 1]} : vector<16x32xf32> to vector<16x8xf32>
      %116 = arith.truncf %115 : vector<16x8xf32> to vector<16x8xbf16>
      %c3_77 = arith.constant 3 : index
      %c0_78 = arith.constant 0 : index
      %c0_79 = arith.constant 0 : index
      %117 = vector.load %arg10[%c3_77, %c0_78, %c0_79] : memref<4x16x8xbf16, #tpu.memory_space<vmem>>, vector<1x16x8xbf16>
      %118 = vector.shape_cast %117 : vector<1x16x8xbf16> to vector<16x8xbf16>
      %119 = vector.shape_cast %116 : vector<16x8xbf16> to vector<1x16x8xbf16>
      tpu.vector_store %arg10[%c3_77, %c0_78, %c0_79], %119 {strides = array<i32>} : memref<4x16x8xbf16, #tpu.memory_space<vmem>>, vector<1x16x8xbf16>,
    } else {
    }
    %c8_i32 = arith.constant 8 : i32
    %5 = arith.muli %arg1, %c8_i32 : i32
    %6 = tpu.assume_multiple %5, 8 : i32
    %c0_2 = arith.constant 0 : index
    %7 = arith.index_cast %6 : i32 to index
    %c0_3 = arith.constant 0 : index
    %8 = vector.load %arg2[%c0_2, %7, %c0_3] : memref<1x16x32xbf16, #tpu.memory_space<vmem>>, vector<1x8x32xbf16>
    %9 = vector.shape_cast %8 : vector<1x8x32xbf16> to vector<8x32xbf16>
    %c0_4 = arith.constant 0 : index
    %c0_5 = arith.constant 0 : index
    %10 = vector.load %arg4[%c0_4, %c0_5] : memref<32x96xbf16, #tpu.memory_space<vmem>>, vector<32x32xbf16>
    %cst = arith.constant dense<0.000000e+00> : vector<8x32xf32>
    %11 = tpu.matmul %9, %10, %cst {dimension_numbers = #tpu.dot_dimension_numbers<[1], [0], [0], [1], [0, 0, 1, 1], [], []>} : vector<8x32xbf16>, vector<32x32xbf16>, vector<8x32xf32> -> vector<8x32xf32>
    %12 = vector.extract_strided_slice %1 {offsets = [0], sizes = [32], strides = [1]} : vector<96xf32> to vector<32xf32>
    %13 = vector.shape_cast %12 : vector<32xf32> to vector<1x32xf32>
    %14 = vector.broadcast %13 : vector<1x32xf32> to vector<8x32xf32>
    %15 = arith.addf %11, %14 : vector<8x32xf32>
    %16 = vector.extract_strided_slice %15 {offsets = [0, 0], sizes = [8, 8], strides = [1, 1]} : vector<8x32xf32> to vector<8x8xf32>
    %17 = arith.truncf %16 : vector<8x8xf32> to vector<8x8xbf16>
    %c0_6 = arith.constant 0 : index
    %c0_7 = arith.constant 0 : index
    %c0_8 = arith.constant 0 : index
    %18 = vector.load %arg11[%c0_6, %c0_7, %c0_8] : memref<4x8x8xbf16, #tpu.memory_space<vmem>>, vector<1x8x8xbf16>
    %19 = vector.shape_cast %18 : vector<1x8x8xbf16> to vector<8x8xbf16>
    %20 = vector.shape_cast %17 : vector<8x8xbf16> to vector<1x8x8xbf16>
    tpu.vector_store %arg11[%c0_6, %c0_7, %c0_8], %20 {strides = array<i32>} : memref<4x8x8xbf16, #tpu.memory_space<vmem>>, vector<1x8x8xbf16>,
    %21 = vector.extract_strided_slice %15 {offsets = [0, 8], sizes = [8, 8], strides = [1, 1]} : vector<8x32xf32> to vector<8x8xf32>
    %22 = arith.truncf %21 : vector<8x8xf32> to vector<8x8xbf16>
    %c1 = arith.constant 1 : index
    %c0_9 = arith.constant 0 : index
    %c0_10 = arith.constant 0 : index
    %23 = vector.load %arg11[%c1, %c0_9, %c0_10] : memref<4x8x8xbf16, #tpu.memory_space<vmem>>, vector<1x8x8xbf16>
    %24 = vector.shape_cast %23 : vector<1x8x8xbf16> to vector<8x8xbf16>
    %25 = vector.shape_cast %22 : vector<8x8xbf16> to vector<1x8x8xbf16>
    tpu.vector_store %arg11[%c1, %c0_9, %c0_10], %25 {strides = array<i32>} : memref<4x8x8xbf16, #tpu.memory_space<vmem>>, vector<1x8x8xbf16>,
    %26 = vector.extract_strided_slice %15 {offsets = [0, 16], sizes = [8, 8], strides = [1, 1]} : vector<8x32xf32> to vector<8x8xf32>
    %27 = arith.truncf %26 : vector<8x8xf32> to vector<8x8xbf16>
    %c2 = arith.constant 2 : index
    %c0_11 = arith.constant 0 : index
    %c0_12 = arith.constant 0 : index
    %28 = vector.load %arg11[%c2, %c0_11, %c0_12] : memref<4x8x8xbf16, #tpu.memory_space<vmem>>, vector<1x8x8xbf16>
    %29 = vector.shape_cast %28 : vector<1x8x8xbf16> to vector<8x8xbf16>
    %30 = vector.shape_cast %27 : vector<8x8xbf16> to vector<1x8x8xbf16>
    tpu.vector_store %arg11[%c2, %c0_11, %c0_12], %30 {strides = array<i32>} : memref<4x8x8xbf16, #tpu.memory_space<vmem>>, vector<1x8x8xbf16>,
    %31 = vector.extract_strided_slice %15 {offsets = [0, 24], sizes = [8, 8], strides = [1, 1]} : vector<8x32xf32> to vector<8x8xf32>
    %32 = arith.truncf %31 : vector<8x8xf32> to vector<8x8xbf16>
    %c3 = arith.constant 3 : index
    %c0_13 = arith.constant 0 : index
    %c0_14 = arith.constant 0 : index
    %33 = vector.load %arg11[%c3, %c0_13, %c0_14] : memref<4x8x8xbf16, #tpu.memory_space<vmem>>, vector<1x8x8xbf16>
    %34 = vector.shape_cast %33 : vector<1x8x8xbf16> to vector<8x8xbf16>
    %35 = vector.shape_cast %32 : vector<8x8xbf16> to vector<1x8x8xbf16>
    tpu.vector_store %arg11[%c3, %c0_13, %c0_14], %35 {strides = array<i32>} : memref<4x8x8xbf16, #tpu.memory_space<vmem>>, vector<1x8x8xbf16>,
    %c0_15 = arith.constant 0 : index
    %c0_16 = arith.constant 0 : index
    %c0_17 = arith.constant 0 : index
    %36 = vector.load %arg3[%c0_15, %c0_16, %c0_17] : memref<1x8x16xf32, #tpu.memory_space<vmem>>, vector<1x8x16xf32>
    %37 = vector.shape_cast %36 : vector<1x8x16xf32> to vector<8x16xf32>
    %cst_18 = arith.constant 1.000000e+00 : f32
    %38 = vector.broadcast %cst_18 : f32 to vector<8x16xf32>
    %39 = arith.subf %38, %37 : vector<8x16xf32>
    %cst_19 = arith.constant -1.000000e+04 : f32
    %40 = vector.broadcast %cst_19 : f32 to vector<8x16xf32>
    %41 = arith.mulf %40, %39 : vector<8x16xf32>
    %c0_i32_20 = arith.constant 0 : i32
    %c4_i32 = arith.constant 4 : i32
    %42 = arith.addi %c0_i32_20, %c4_i32 : i32
    %c1_i32 = arith.constant 1 : i32
    scf.for %arg14 = %c0_i32_20 to %42 step %c1_i32  : i32 {
      %66 = arith.index_cast %arg14 : i32 to index
      %c0_49 = arith.constant 0 : index
      %c0_50 = arith.constant 0 : index
      %67 = vector.load %arg11[%66, %c0_49, %c0_50] : memref<4x8x8xbf16, #tpu.memory_space<vmem>>, vector<1x8x8xbf16>
      %68 = vector.shape_cast %67 : vector<1x8x8xbf16> to vector<8x8xbf16>
      %69 = arith.index_cast %arg14 : i32 to index
      %c0_51 = arith.constant 0 : index
      %c0_52 = arith.constant 0 : index
      %70 = vector.load %arg9[%69, %c0_51, %c0_52] : memref<4x16x8xbf16, #tpu.memory_space<vmem>>, vector<1x16x8xbf16>
      %71 = vector.shape_cast %70 : vector<1x16x8xbf16> to vector<16x8xbf16>
      %72 = arith.index_cast %arg14 : i32 to index
      %c0_53 = arith.constant 0 : index
      %c0_54 = arith.constant 0 : index
      %73 = vector.load %arg10[%72, %c0_53, %c0_54] : memref<4x16x8xbf16, #tpu.memory_space<vmem>>, vector<1x16x8xbf16>
      %74 = vector.shape_cast %73 : vector<1x16x8xbf16> to vector<16x8xbf16>
      %cst_55 = arith.constant dense<0.000000e+00> : vector<8x16xf32>
      %75 = tpu.matmul %68, %71, %cst_55 {dimension_numbers = #tpu.dot_dimension_numbers<[1], [1], [0], [0], [0, 0, 1, 0], [], []>} : vector<8x8xbf16>, vector<16x8xbf16>, vector<8x16xf32> -> vector<8x16xf32>
      %76 = arith.mulf %75, %37 : vector<8x16xf32>
      %77 = arith.addf %76, %41 : vector<8x16xf32>
      %cst_56 = arith.constant dense<0xFF800000> : vector<8xf32>
      %78 = vector.multi_reduction <maximumf>, %77, %cst_56 [1] : vector<8x16xf32> to vector<8xf32>
      %79 = vector.shape_cast %78 : vector<8xf32> to vector<8x1xf32>
      %80 = vector.broadcast %79 : vector<8x1xf32> to vector<8x16xf32>
      %81 = arith.subf %77, %80 : vector<8x16xf32>
      %82 = math.exp %81 : vector<8x16xf32>
      %cst_57 = arith.constant dense<0.000000e+00> : vector<8xf32>
      %83 = vector.multi_reduction <add>, %82, %cst_57 [1] : vector<8x16xf32> to vector<8xf32>
      %84 = vector.shape_cast %83 : vector<8xf32> to vector<8x1xf32>
      %85 = tpu.reciprocal %84 {approx = true} : vector<8x1xf32> -> vector<8x1xf32>
      %86 = vector.broadcast %85 : vector<8x1xf32> to vector<8x16xf32>
      %87 = arith.mulf %82, %86 : vector<8x16xf32>
      %88 = arith.truncf %87 : vector<8x16xf32> to vector<8x16xbf16>
      %cst_58 = arith.constant dense<0.000000e+00> : vector<8x8xf32>
      %89 = tpu.matmul %88, %74, %cst_58 {dimension_numbers = #tpu.dot_dimension_numbers<[1], [0], [0], [1], [0, 0, 1, 1], [], []>} : vector<8x16xbf16>, vector<16x8xbf16>, vector<8x8xf32> -> vector<8x8xf32>
      %90 = arith.truncf %89 : vector<8x8xf32> to vector<8x8xbf16>
      %91 = arith.index_cast %arg14 : i32 to index
      %c0_59 = arith.constant 0 : index
      %c0_60 = arith.constant 0 : index
      %92 = vector.load %arg12[%91, %c0_59, %c0_60] : memref<4x8x8xbf16, #tpu.memory_space<vmem>>, vector<1x8x8xbf16>
      %93 = vector.shape_cast %92 : vector<1x8x8xbf16> to vector<8x8xbf16>
      %94 = vector.shape_cast %90 : vector<8x8xbf16> to vector<1x8x8xbf16>
      tpu.vector_store %arg12[%91, %c0_59, %c0_60], %94 {strides = array<i32>} : memref<4x8x8xbf16, #tpu.memory_space<vmem>>, vector<1x8x8xbf16>,
    }
    %c4_i32_21 = arith.constant 4 : i32
    %c0_22 = arith.constant 0 : index
    %c0_23 = arith.constant 0 : index
    %c0_24 = arith.constant 0 : index
    %43 = vector.load %arg12[%c0_22, %c0_23, %c0_24] : memref<4x8x8xbf16, #tpu.memory_space<vmem>>, vector<1x8x8xbf16>
    %44 = vector.shape_cast %43 : vector<1x8x8xbf16> to vector<8x8xbf16>
    %c0_25 = arith.constant 0 : index
    %c0_26 = arith.constant 0 : index
    %45 = vector.load %arg13[%c0_25, %c0_26] : memref<8x32xbf16, #tpu.memory_space<vmem>>, vector<8x8xbf16>
    tpu.vector_store %arg13[%c0_25, %c0_26], %44 {strides = array<i32>} : memref<8x32xbf16, #tpu.memory_space<vmem>>, vector<8x8xbf16>,
    %c1_27 = arith.constant 1 : index
    %c0_28 = arith.constant 0 : index
    %c0_29 = arith.constant 0 : index
    %46 = vector.load %arg12[%c1_27, %c0_28, %c0_29] : memref<4x8x8xbf16, #tpu.memory_space<vmem>>, vector<1x8x8xbf16>
    %47 = vector.shape_cast %46 : vector<1x8x8xbf16> to vector<8x8xbf16>
    %c0_30 = arith.constant 0 : index
    %c8 = arith.constant 8 : index
    %48 = vector.load %arg13[%c0_30, %c8] : memref<8x32xbf16, #tpu.memory_space<vmem>>, vector<8x8xbf16>
    tpu.vector_store %arg13[%c0_30, %c8], %47 {strides = array<i32>} : memref<8x32xbf16, #tpu.memory_space<vmem>>, vector<8x8xbf16>,
    %c2_31 = arith.constant 2 : index
    %c0_32 = arith.constant 0 : index
    %c0_33 = arith.constant 0 : index
    %49 = vector.load %arg12[%c2_31, %c0_32, %c0_33] : memref<4x8x8xbf16, #tpu.memory_space<vmem>>, vector<1x8x8xbf16>
    %50 = vector.shape_cast %49 : vector<1x8x8xbf16> to vector<8x8xbf16>
    %c0_34 = arith.constant 0 : index
    %c16 = arith.constant 16 : index
    %51 = vector.load %arg13[%c0_34, %c16] : memref<8x32xbf16, #tpu.memory_space<vmem>>, vector<8x8xbf16>
    tpu.vector_store %arg13[%c0_34, %c16], %50 {strides = array<i32>} : memref<8x32xbf16, #tpu.memory_space<vmem>>, vector<8x8xbf16>,
    %c3_35 = arith.constant 3 : index
    %c0_36 = arith.constant 0 : index
    %c0_37 = arith.constant 0 : index
    %52 = vector.load %arg12[%c3_35, %c0_36, %c0_37] : memref<4x8x8xbf16, #tpu.memory_space<vmem>>, vector<1x8x8xbf16>
    %53 = vector.shape_cast %52 : vector<1x8x8xbf16> to vector<8x8xbf16>
    %c0_38 = arith.constant 0 : index
    %c24 = arith.constant 24 : index
    %54 = vector.load %arg13[%c0_38, %c24] : memref<8x32xbf16, #tpu.memory_space<vmem>>, vector<8x8xbf16>
    tpu.vector_store %arg13[%c0_38, %c24], %53 {strides = array<i32>} : memref<8x32xbf16, #tpu.memory_space<vmem>>, vector<8x8xbf16>,
    %c0_39 = arith.constant 0 : index
    %c0_40 = arith.constant 0 : index
    %55 = vector.load %arg13[%c0_39, %c0_40] : memref<8x32xbf16, #tpu.memory_space<vmem>>, vector<8x32xbf16>
    %c0_41 = arith.constant 0 : index
    %c0_42 = arith.constant 0 : index
    %56 = vector.load %arg6[%c0_41, %c0_42] : memref<32x32xbf16, #tpu.memory_space<vmem>>, vector<32x32xbf16>
    %cst_43 = arith.constant dense<0.000000e+00> : vector<8x32xf32>
    %57 = tpu.matmul %55, %56, %cst_43 {dimension_numbers = #tpu.dot_dimension_numbers<[1], [0], [0], [1], [0, 0, 1, 1], [], []>} : vector<8x32xbf16>, vector<32x32xbf16>, vector<8x32xf32> -> vector<8x32xf32>
    %c0_44 = arith.constant 0 : index
    %c0_45 = arith.constant 0 : index
    %58 = vector.load %arg7[%c0_44, %c0_45] : memref<1x32xf32, #tpu.memory_space<vmem>>, vector<1x32xf32>
    %59 = vector.shape_cast %58 : vector<1x32xf32> to vector<32xf32>
    %60 = vector.shape_cast %59 : vector<32xf32> to vector<1x32xf32>
    %61 = vector.broadcast %60 : vector<1x32xf32> to vector<8x32xf32>
    %62 = arith.addf %57, %61 : vector<8x32xf32>
    %c0_46 = arith.constant 0 : index
    %c0_47 = arith.constant 0 : index
    %c0_48 = arith.constant 0 : index
    %63 = vector.load %arg8[%c0_46, %c0_47, %c0_48] : memref<1x8x32xf32, #tpu.memory_space<vmem>>, vector<1x8x32xf32>
    %64 = vector.shape_cast %63 : vector<1x8x32xf32> to vector<8x32xf32>
    %65 = vector.shape_cast %62 : vector<8x32xf32> to vector<1x8x32xf32>
    tpu.vector_store %arg8[%c0_46, %c0_47, %c0_48], %65 {strides = array<i32>} : memref<1x8x32xf32, #tpu.memory_space<vmem>>, vector<1x8x32xf32>,
    return
  }
  func.func @transform_0(%arg0: i32, %arg1: i32) -> (i32, i32, i32) {
    %c0_i32 = arith.constant 0 : i32
    %c0_i32_0 = arith.constant 0 : i32
    %c0_i32_1 = arith.constant 0 : i32
    return %arg0, %c0_i32, %c0_i32_0 : i32, i32, i32
  }
  func.func @transform_1(%arg0: i32, %arg1: i32) -> (i32, i32, i32) {
    %c0_i32 = arith.constant 0 : i32
    %c0_i32_0 = arith.constant 0 : i32
    return %arg0, %arg1, %c0_i32 : i32, i32, i32
  }
  func.func @transform_2(%arg0: i32, %arg1: i32) -> (i32, i32) {
    %c0_i32 = arith.constant 0 : i32
    %c0_i32_0 = arith.constant 0 : i32
    %c0_i32_1 = arith.constant 0 : i32
    return %c0_i32, %c0_i32_0 : i32, i32
  }
  func.func @transform_3(%arg0: i32, %arg1: i32) -> (i32, i32) {
    %c0_i32 = arith.constant 0 : i32
    %c0_i32_0 = arith.constant 0 : i32
    %c0_i32_1 = arith.constant 0 : i32
    return %c0_i32, %c0_i32_0 : i32, i32
  }
  func.func @transform_4(%arg0: i32, %arg1: i32) -> (i32, i32) {
    %c0_i32 = arith.constant 0 : i32
    %c0_i32_0 = arith.constant 0 : i32
    %c0_i32_1 = arith.constant 0 : i32
    return %c0_i32, %c0_i32_0 : i32, i32
  }
  func.func @transform_5(%arg0: i32, %arg1: i32) -> (i32, i32) {
    %c0_i32 = arith.constant 0 : i32
    %c0_i32_0 = arith.constant 0 : i32
    %c0_i32_1 = arith.constant 0 : i32
    return %c0_i32, %c0_i32_0 : i32, i32
  }
  func.func @transform_6(%arg0: i32, %arg1: i32) -> (i32, i32, i32) {
    %c0_i32 = arith.constant 0 : i32
    %c0_i32_0 = arith.constant 0 : i32
    return %arg0, %arg1, %c0_i32 : i32, i32, i32
  }
}

</mosaic_0001>

<bundles_post_ra>
// kernel: tpu_custom_call.1
= control target key start
LH: loop header
LB: loop body
LE: loop exit
PB: predicated region body
PF: predicated region fallthrough
CT: control target
= control target key end

     0   :  { %s2019_s0 = inlined_call_operand.hbm [shape: bf16[2,16,32], index: 0, kind: input, shape index: {}]   ;;  %s2020_s1 = inlined_call_operand.hbm [shape: f32[2,16,16], index: 1, kind: input, shape index: {}]   ;;  %s2021_s2 = inlined_call_operand.hbm [shape: bf16[32,96], index: 2, kind: input, shape index: {}]   ;;  %s2022_s3 = inlined_call_operand.vmem [shape: f32[1,96], index: 3, kind: input, shape index: {}]   ;;  %s2023_s4 = inlined_call_operand.hbm [shape: bf16[32,32], index: 4, kind: input, shape index: {}]   ;;  %s2024_s5 = inlined_call_operand.vmem [shape: f32[1,32], index: 5, kind: input, shape index: {}]   ;;  %s2025_s6 = inlined_call_operand.hbm [shape: f32[2,16,32], index: 6, kind: output, shape index: {}]  }
   0x1   :  { %2037 = sst [smem:[#allocation28_spill]] %s2019_s0 }
   0x2   :  { %2038 = sst [smem:[#allocation29_spill]] %s2021_s2 }
   0x3   :  { %2039 = sst [smem:[#allocation30_spill]] %s2022_s3 }
   0x4   :  { %2040 = sst [smem:[#allocation31_spill]] %s2023_s4 }
   0x5   :  { %2041 = sst [smem:[#allocation32_spill]] %s2024_s5 }
   0x6   :  { %2042 = sst [smem:[#allocation33_spill]] %s2025_s6 }
   0x7   :  { %11 = vsyncpa [#allocation8], 0 }
   0x8   :  { %13 = vsyncpa [#allocation8 + $0x1], 0 }
   0x9   :  { %14 = vsyncpa [#allocation11], 0 }
   0xa   :  { %16 = vsyncpa [#allocation11 + $0x1], 0 }
   0xb   :  { %17 = vsyncpa [#allocation14], 0 }
   0xc   :  { %18 = vsyncpa [#allocation9], 0 }
   0xd   :  { %20 = vsyncpa [#allocation9 + $0x1], 0  ;;  %s1648_s21 = smov 0   ;;  %s1650_s22 = smov 0  }
   0xe   :  { %s1652_s23 = smov 0   ;;  %s1654_s24 = smov 0  }
   0xf   :  { %s1656_s25 = smov 0   ;;  %s1658_s26 = smov 0  }
  0x10   :  { %s1660_s27 = smov 0   ;;  %s1662_s28 = smov 0  }
  0x11   :  { %s1664_s29 = smov 0   ;;  %s1666_s30 = smov 0  }
  0x12   :  { %s1668_s7 = smov 0  }
  0x13 LB: > { %2043 = sst [smem:[#allocation21_spill]] %s1543_s21  ;;  %s1702_s8 = sadd.s32 4294967295, %s1583_s7   ;;  %s1583_s7 = sphi %s1668_s7, %s26_s7   ;;  %s1579_s30 = sphi %s1666_s30, %s2093_s30   ;;  %s1575_s29 = sphi %s1664_s29, %s2092_s29   ;;  %s1571_s28 = sphi %s1662_s28, %s2091_s28   ;;  %s1567_s27 = sphi %s1660_s27, %s2090_s27   ;;  %s1563_s26 = sphi %s1658_s26, %s2089_s26   ;;  %s1559_s25 = sphi %s1656_s25, %s2088_s25   ;;  %s1555_s24 = sphi %s1654_s24, %s2087_s24   ;;  %s1551_s23 = sphi %s1652_s23, %s2086_s23   ;;  %s1547_s22 = sphi %s1650_s22, %s2085_s22   ;;  %s1543_s21 = sphi %s1648_s21, %s2084_s21  }
  0x14   : > { %2044 = sst [smem:[#allocation22_spill]] %s1567_s27  ;;  %p58_p0 = scmp.ne.s32.totalorder %s1559_s25, %s1555_s24 }
  0x15   : > { %2045 = sst [smem:[#allocation23_spill]] %s1571_s28  ;;  %p2029_p1 = scmp.eq.s32.totalorder %s1702_s8, 0 }
  0x16   : > { %p196_p2 = scmp.eq.s32.totalorder %s1702_s8, 3  ;;  %p1053_p3 = scmp.ge.s32.totalorder %s1583_s7, 1 }
  0x17   : > { %p209_p4 = scmp.lt.s32.totalorder %s1583_s7, 5  ;;  %p1711_p5 = por %p2029_p1, %p58_p0 }
  0x18   : > { %s1589_s11 = smov [#allocation12]   ;;  %s1590_s14 = smov [#allocation13]  }
  0x19   : > { %p1715_p6 = pnand %p1053_p3, %p209_p4  ;;  %s221_s12 = sshll.u32 %s1589_s11, 4  ;;  %s222_s12 = int_to_ptr.vmem [resolvable:$true] %s221_s12 }
  0x1a   : > { %s237_s15 = sshll.u32 %s1590_s14, 4  ;;  %s1350_s16 = scalar_lea.vmem %s222_s12, 256  ;;  %s238_s15 = int_to_ptr.vmem [resolvable:$true] %s237_s15 }
  0x1b   : > { %p1185_p7 = pneg %p1715_p6  ;;  %p1351_p10 = scmp.ne.s32.totalorder %s222_s12, %s1350_s16 }
  0x1c   : > { %p1358_p13 = scmp.lt.s32.totalorder %s222_s12, %s222_s12  ;;  %p1359_p0 = scmp.lt.s32.totalorder %s1350_s16, %s1350_s16 }
  0x1d   : > { %p1723_p8 = pnand %p1185_p7, %p2029_p1 }
  0x1e   : > { %p1360_p3 = por %p1359_p0, %p1358_p13 }
  0x1f   : > { %p1341_p9 = pneg %p1723_p8 }
  0x21   : > { %p1353_p11 = pnand %p1351_p10, %p1341_p9 }
  0x23   : > { %p1354_p12 = pneg %p1353_p11 }
  0x25   : > { %p1361_p4 = pnand %p1360_p3, %p1354_p12 }
  0x27   : > { %1364 = shalt.err (!%p1361_p4)
}
  0x28   : > { %s2027_s17 = smov 64   ;;  %s2028_s18 = smov 4  }
  0x29   : > { %s2049_s2 = sld [smem:[#allocation29_spill]]  ;;  %s1376_s24 = scalar_lea.vmem %s238_s15, 256 }
  0x2a   : > { %p1377_p7 = scmp.ne.s32.totalorder %s238_s15, %s1376_s24  ;;  %p1384_p12 = scmp.lt.s32.totalorder %s238_s15, %s238_s15 }
  0x2b   : > { %p1385_p13 = scmp.lt.s32.totalorder %s1376_s24, %s1376_s24 }
  0x2c   : > { %p1379_p10 = pnand %p1377_p7, %p1341_p9 }
  0x2d   : > { %p1386_p0 = por %p1385_p13, %p1384_p12 }
  0x2e   : > { %p1380_p11 = pneg %p1379_p10 }
  0x2f   : > { %1188 = dma.hbm_to_vmem [thread:$0]  (!%p1723_p8), %s2049_s2, 256, %s222_s12, [#allocation11], %s2027_s17, %s2027_s17, %s2028_s18  }
  0x30   : > { %p1387_p3 = pnand %p1386_p0, %p1380_p11 }
  0x32   : > { %1390 = shalt.err (!%p1387_p3)
}
  0x33   : > { %s2050_s4 = sld [smem:[#allocation31_spill]]  ;;  %p52_p9 = scmp.ne.s32.totalorder %s1563_s26, %s1559_s25 }
  0x34   : > { %p53_p4 = scmp.eq.s32.totalorder %s1583_s7, 0  ;;  %p1205_p7 = scmp.lt.s32.totalorder %s1583_s7, 4 }
  0x35   : > { %s254_s13 = sand.u32 1, %s1563_s26   ;;  %s1103_s19 = sshll.u32 %s1579_s30, 7 }
  0x36   : > { %p54_p10 = por %p53_p4, %p52_p9  ;;  %s1057_s16 = sshll.u32 %s254_s13, 3 }
  0x37   : > { %s2051_s0 = sld [smem:[#allocation28_spill]]  ;;  %s258_s14 = scalar_lea.vmem [#allocation7], %s1057_s16 }
  0x38   : > { %s265_s2 = sshll.u32 %s258_s14, 4  ;;  %p1765_p11 = pnand %p1205_p7, %p54_p10  ;;  %s266_s2 = int_to_ptr.vmem [resolvable:$true] %s265_s2 }
  0x39   : > { %1191 = dma.hbm_to_vmem [thread:$0]  (!%p1723_p8), %s2050_s4, 256, %s238_s15, [#allocation14], %s2027_s17, %s2027_s17, %s2028_s18  }
  0x3a   : > { %s255_s15 = scalar_lea.sflag [#allocation8], %s254_s13  ;;  %p1393_p8 = pneg %p1765_p11 }
  0x3b   : > { %s1404_s12 = scalar_lea.vmem %s266_s2, 128  ;;  %s1593_s17 = smov [#allocation7]  }
  0x3c   : > { %p1405_p12 = scmp.ne.s32.totalorder %s266_s2, %s1404_s12  ;;  %s1409_s18 = sshll.u32 %s1593_s17, 4  ;;  %s1410_s18 = int_to_ptr.vmem [resolvable:$false] %s1409_s18 }
  0x3d   : > { %s264_s11 = scalar_lea.hbm %s2051_s0, %s1103_s19  ;;  %s1411_s19 = scalar_lea.vmem %s1410_s18, 256 }
  0x3e   : > { %p1407_p13 = pnand %p1405_p12, %p1393_p8  ;;  %p1412_p3 = scmp.lt.s32.totalorder %s266_s2, %s1410_s18 }
  0x3f   : > { %p1413_p9 = scmp.lt.s32.totalorder %s1411_s19, %s1404_s12 }
  0x40   : > { %p1408_p0 = pneg %p1407_p13 }
  0x41   : > { %p1414_p1 = por %p1413_p9, %p1412_p3 }
  0x43   : > { %p1415_p10 = pnand %p1414_p1, %p1408_p0 }
  0x45   : > { %1418 = shalt.err (!%p1415_p10)
}
  0x46   : > { %s2053_s16 = smov 4   ;;  %s2054_s20 = smov 64  }
  0x47   : > { %1195 = dma.hbm_to_vmem [thread:$0]  (!%p1765_p11), %s264_s11, 128, %s266_s2, %s255_s15, %s2054_s20, %s2054_s20, %s2053_s16  }
  0x48   : > { %s1052_s17 = sadd.s32 4294967294, %s1583_s7   ;;  %s35_s18 = sadd.s32 1, %s1575_s29 }
  0x49   : > { %p36_p1 = scmp.ge.s32.totalorder %s35_s18, 2  ;;  %s38_s6 = sadd.s32 1, %s1579_s30 }
  0x4a   : > { %s73_s12 = sadd.s32 1, %s1551_s23  ;;  %p80_p8 = scmp.ne.s32.totalorder %s1551_s23, %s1547_s22 }
  0x4b   : > { %s2095_s18 = smov (%p36_p1, %s35_s18), 0  ;;  %s2097_s6 = smov (!%p36_p1, %s38_s6), %s1579_s30 }
  0x4c   : > { %2055 = sst [smem:[#allocation24_spill]] %s2095_s18  ;;  %s69_s13 = ssub.s32 %s1575_s29, %s2095_s18 }
  0x4d   : > { %p1789_p11 = por %p80_p8, %p53_p4  ;;  %p40_p12 = scmp.ge.s32.totalorder %s2097_s6, 2 }
  0x4e   : > { %p86_p13 = scmp.ne.s32.totalorder %s1547_s22, %s1543_s21  ;;  %p1797_p0 = por %p196_p2, %p80_p8 }
  0x4f   : > { %p202_p3 = scmp.eq.s32.totalorder %s1052_s17, 3  ;;  %s2099_s6 = smov (%p40_p12, %s2097_s6), 0 }
  0x50   : > { %s2057_s24 = scalar_select %p1797_p0, 1, 0 }
  0x51   : > { %2059 = sst [smem:[#allocation26_spill]] %s2099_s6  ;;  %p2060_p9 = scmp.eq.s32.totalorder %s1702_s8, 0 }
  0x52   : > { %2058 = sst [smem:[#allocation25_spill]] %s2057_s24  ;;  %p1809_p4 = por %p202_p3, %p86_p13 }
  0x53   : > { %p1805_p10 = por %p86_p13, %p2060_p9  ;;  %s42_s15 = ssub.s32 %s1579_s30, %s2099_s6 }
  0x54   : > { %s2062_s14 = scalar_select %p1809_p4, 1, 0 }
  0x55   : > { %s275_s19 = sand.u32 1, %s1583_s7   ;;  %p43_p2 = scmp.eq.s32.totalorder %s42_s15, 0 }
  0x56   : > { %2063 = sst [smem:[#allocation27_spill]] %s2062_s14  ;;  %s70_s16 = sor.u32 %s69_s13, %s42_s15 }
  0x57   : > { %p71_p1 = scmp.eq.s32.totalorder %s70_s16, 0  ;;  %s2064_s20 = sadd.s32 1, %s1563_s26 }
  0x58   : > { %s1819_s17 = scalar_select %p43_p2, %s1563_s26, %s2064_s20  }
  0x59   : > { %s1822_s0 = scalar_select %p71_p1, %s1551_s23, %s73_s12  }
  0x5a   : > { %s277_s4 = sand.u32 1, %s1551_s23   ;;  %s1061_s18 = sshll.u32 %s1579_s30, 1 }
  0x5b   : > { %s1060_s21 = sshll.u32 %s277_s4, 3  ;;  %s284_s5 = sadd.s32 %s1575_s29, %s1061_s18 }
  0x5c   : > { %s1062_s24 = sshll.u32 %s284_s5, 7  ;;  %s279_s14 = scalar_lea.vmem [#allocation10], %s1060_s21 }
  0x5d   : > { %s286_s6 = scalar_lea.hbm %s2020_s1, %s1062_s24  ;;  %s288_s3 = sshll.u32 %s279_s14, 4  ;;  %s289_s3 = int_to_ptr.vmem [resolvable:$true] %s288_s3 }
  0x5e   : > { %p1834_p8 = pnand %p1205_p7, %p1789_p11  ;;  %s276_s12 = scalar_lea.sflag [#allocation11], %s275_s19 }
  0x5f   : > { %s1432_s4 = scalar_lea.vmem %s289_s3, 128  ;;  %s1594_s5 = smov [#allocation10]  }
  0x60   : > { %p1421_p12 = pneg %p1834_p8  ;;  %p1433_p13 = scmp.ne.s32.totalorder %s289_s3, %s1432_s4 }
  0x61   : > { %s1437_s27 = sshll.u32 %s1594_s5, 4  ;;  %s1438_s27 = int_to_ptr.vmem [resolvable:$false] %s1437_s27 }
  0x62   : > { %p1435_p3 = pnand %p1433_p13, %p1421_p12  ;;  %s1439_s21 = scalar_lea.vmem %s1438_s27, 256 }
  0x63   : > { %p1440_p2 = scmp.lt.s32.totalorder %s289_s3, %s1438_s27  ;;  %p1441_p1 = scmp.lt.s32.totalorder %s1439_s21, %s1432_s4 }
  0x64   : > { %p1436_p9 = pneg %p1435_p3 }
  0x65   : > { %p1442_p4 = por %p1441_p1, %p1440_p2 }
  0x67   : > { %p1443_p0 = pnand %p1442_p4, %p1436_p9 }
  0x69   : > { %1446 = shalt.err (!%p1443_p0)
}
  0x6a   : > { %1198 = dma.hbm_to_vmem [thread:$0]  (!%p1834_p8), %s286_s6, 128, %s289_s3, %s276_s12  }
  0x6b   : > { %297 = sbr.rel (%p1715_p6) target bundleno = 1988 (0x7c4), region = 44  ;;  %s299_s28 = sand.u32 (!%p1715_p6), 1, %s1559_s25  }
  0x6c   : > { %s1845_s18 = sshll.u32 (!%p1715_p6), %s299_s28, 3  ;;  %s300_s2 = scalar_lea.sflag (!%p1715_p6), [#allocation8], %s299_s28 }
  0x6d   : > { %s303_s24 = scalar_lea.vmem (!%p1715_p6), [#allocation7], %s1845_s18 }
  0x70   : > { %1522 = dma.done.wait (%p1711_p5), %s300_s2, 128  }
  0x71   : > { %1524 = vsyncadd (%p1711_p5), %s300_s2, 4294967168  ;;  %s308_s3 = sand.u32 1, %s1702_s8   ;;  %s310_s10 = sand.u32 1, %s1547_s22  }
  0x72   : > { %s1856_s6 = sshll.u32 %s310_s10, 3  ;;  %s309_s14 = scalar_lea.sflag [#allocation11], %s308_s3 }
  0x73   : > { %s312_s15 = scalar_lea.vmem [#allocation10], %s1856_s6 }
  0x74   : > { %1526 = dma.done.wait (%p1805_p10), %s309_s14, 128  }
  0x75   : > { %1528 = vsyncadd (%p1805_p10), %s309_s14, 4294967168  ;;  %p2066_p6 = scmp.eq.s32.totalorder %s1702_s8, 0 }
  0x77   : > { %1530 = dma.done.wait (%p2066_p6), [#allocation11], 256   ;;  %p2067_p5 = pmov %p2066_p6 }
  0x79   : > { %1532 = vsyncadd (%p2067_p5), [#allocation11], 4294967040  ;;  %p2068_p7 = pmov %p2067_p5 }
  0x7a   : > { %p2069_p11 = pmov %p2067_p5 }
  0x7b   : > { %1534 = dma.done.wait (%p2068_p7), [#allocation14], 256  }
  0x7c   : > { %1536 = vsyncadd (%p2069_p11), [#allocation14], 4294967040  ;;  %s2070_s16 = sld [smem:[#allocation30_spill]]  ;;  %s353_s11 = scalar_lea.vmem [#allocation15], %s1856_s6 }
  0x7d   : > { %s2071_s20 = sld [smem:[#allocation22_spill]] }
  0x82   : > { %v1874_v0 = vld [vmem:[%s2070_s16] sm:$0x1] }
  0x83   : > { %p1069_p0 = scmp.ne.s32.totalorder %s2071_s20, 0 }
  0x84   : > { %s1595_s13 = smov (!%p1069_p0), 96   ;;  %s1598_s8 = smov (!%p1069_p0), 64  }
  0x85   : > { %359 = sbr.rel (%p1069_p0) target bundleno = 598 (0x256), region = 64  ;;  %s1599_s12 = smov (!%p1069_p0), 120  }
  0x86   : > { %s1600_s4 = smov (!%p1069_p0), 112   ;;  %s1601_s5 = smov (!%p1069_p0), 104  }
  0x8a   : > { %v1326_v1 = vld [vmem:[#allocation12 + $0x8] sm:$0xff]   ;;  %v367_v2 = vlaneseq  ;;  %v1327_v3 = vld [vmem:[#allocation12] sm:$0xff]   ;;  %v1596_v4 = vmov 0.0   ;;  %vm1597_vm0 = vmmov 0   ;;  %vm395_vm1 = vcmask 261120  }
  0x8b   : > { %388 = vrot.lane.b32.xlu0 %v1326_v1, %s1595_s13  ;;  %386 = vrot.lane.b32.xlu1 %v1327_v3, %s1595_s13  ;;  %v1328_v11 = vld [vmem:[%s303_s24] sm:$0xff]   ;;  %vm498_vm2 = vcmask 60416  }
  0x8c   : > { %1127 = vmatprep.subr.bf16.mxu0 %v1596_v4  ;;  %v368_v5 = vshrl.u32 %v367_v2, 7  ;;  %1135 = vmatprep.subr.bf16.mxu1 %v1596_v4 }
  0x8d   : > { %1131 = vmatprep.mubr.msk.bf16.mxu0 %vm1597_vm0, %v1596_v4  ;;  %1139 = vmatprep.mubr.msk.bf16.mxu1 %vm1597_vm0, %v1596_v4 }
  0x8e   : > { %v369_v6 = vsub.s32 0, %v368_v5 }
  0x8f   : > { %442 = vrot.lane.b32.xlu0 %v1326_v1, %s1598_s8  ;;  %440 = vrot.lane.b32.xlu1 %v1327_v3, %s1598_s8 }
  0x90   : > { %v370_v7 = vrot.slane %v1874_v0, %v369_v6 }
  0x93   : > { %392 = vrot.lane.b32.xlu0 %v370_v7, %s1595_s13  ;;  %446 = vrot.lane.b32.xlu1 %v370_v7, %s1598_s8 }
  0xfd   : > { %v389_v8 = vpop.permute.xlu0 %388  ;;  %v387_v9 = vpop.permute.xlu1 %386 }
  0xfe   : > { %1128 = vmatpush3.bf16.msra.mxu0 %v389_v8 }
  0xff   : > { %1129 = vmatprep.subr.bf16.mxu0 %v1596_v4 }
 0x101   : > { %v443_v10 = vpop.permute.xlu0 %442  ;;  %v441_v12 = vpop.permute.xlu1 %440 }
 0x102   : > { %1130 = vmatpush3.bf16.msra.mxu0 %v387_v9  ;;  %1136 = vmatpush3.bf16.msra.mxu1 %v443_v10 }
 0x103   : > { %1137 = vmatprep.subr.bf16.mxu1 %v1596_v4 }
 0x105   : > { %1132 = vmatmul.mubr.msk.bf16.vlgmr.msra.gmra.mxu0 %vm395_vm1, %v1328_v11  ;;  %v393_v13 = vpop.permute.xlu0 %392  ;;  %v447_v17 = vpop.permute.xlu1 %446 }
 0x106   : > { %1138 = vmatpush3.bf16.msra.mxu1 %v441_v12 }
 0x109   : > { %1140 = vmatmul.mubr.msk.bf16.vlgmr.msra.gmra.mxu1 %vm395_vm1, %v1328_v11 }
 0x1c5   : > { %v433_v14 = vpop.f32.mrf.mxu0 }
 0x1c6   : > { %v434_v15 = vadd.f32 %v433_v14, %v393_v13 }
 0x1c7   : > { %v1133_v16 = vpop.f32.mrf.mxu0 }
 0x1c8   : > { %v1104_v18 = vpack.c.bf16 %v434_v15, %v434_v15 }
 0x1c9   : > { %v436_v19 = vpop.f32.mrf.mxu0  ;;  %v483_v20 = vpop.f32.mrf.mxu1 }
 0x1ca   : > { %499 = vst.msk [vmem:[#allocation2] sm:$0xf] %vm498_vm2, %v1104_v18  ;;  %v437_v21 = vadd.f32 %v436_v19, %v393_v13  ;;  %v484_v22 = vadd.f32 %v483_v20, %v447_v17  ;;  %511 = vrot.lane.b32.xlu0 %v1104_v18, %s1599_s12 }
 0x1cb   : > { %v1134_v23 = vpop.f32.mrf.mxu0  ;;  %v1141_v24 = vpop.f32.mrf.mxu1 }
 0x1cc   : > { %v1105_v25 = vpack.c.bf16 %v437_v21, %v437_v21  ;;  %v1106_v26 = vpack.c.bf16 %v484_v22, %v484_v22 }
 0x1cd   : > { %v486_v27 = vpop.f32.mrf.mxu1 }
 0x1ce   : > { %500 = vst.msk [vmem:[#allocation2 + $0x4] sm:$0xf] %vm498_vm2, %v1105_v25  ;;  %509 = vst.msk [vmem:[#allocation3] sm:$0xf] %vm498_vm2, %v1106_v26  ;;  %v487_v28 = vadd.f32 %v486_v27, %v447_v17  ;;  %520 = vrot.lane.b32.xlu0 %v1106_v26, %s1599_s12  ;;  %513 = vrot.lane.b32.xlu1 %v1105_v25, %s1599_s12 }
 0x1cf   : > { %v1142_v29 = vpop.f32.mrf.mxu1 }
 0x1d0   : > { %v1107_v30 = vpack.c.bf16 %v487_v28, %v487_v28 }
 0x1d2   : > { %510 = vst.msk [vmem:[#allocation3 + $0x4] sm:$0xf] %vm498_vm2, %v1107_v30  ;;  %529 = vrot.lane.b32.xlu0 %v1104_v18, %s1600_s4  ;;  %522 = vrot.lane.b32.xlu1 %v1107_v30, %s1599_s12 }
 0x1d6   : > { %538 = vrot.lane.b32.xlu0 %v1106_v26, %s1600_s4  ;;  %531 = vrot.lane.b32.xlu1 %v1105_v25, %s1600_s4 }
 0x1da   : > { %547 = vrot.lane.b32.xlu0 %v1104_v18, %s1601_s5  ;;  %540 = vrot.lane.b32.xlu1 %v1107_v30, %s1600_s4 }
 0x1de   : > { %556 = vrot.lane.b32.xlu0 %v1106_v26, %s1601_s5  ;;  %549 = vrot.lane.b32.xlu1 %v1105_v25, %s1601_s5 }
 0x1e2   : > { %558 = vrot.lane.b32.xlu1 %v1107_v30, %s1601_s5 }
 0x23c   : > { %v512_v31 = vpop.permute.xlu0 %511 }
 0x23d   : > { %518 = vst.msk [vmem:[#allocation2 + $0x8] sm:$0xf] %vm498_vm2, %v512_v31 }
 0x240   : > { %v521_v32 = vpop.permute.xlu0 %520  ;;  %v514_v33 = vpop.permute.xlu1 %513 }
 0x241   : > { %527 = vst.msk [vmem:[#allocation3 + $0x8] sm:$0xf] %vm498_vm2, %v521_v32  ;;  %519 = vst.msk [vmem:[#allocation2 + $0xc] sm:$0xf] %vm498_vm2, %v514_v33 }
 0x244   : > { %v530_v34 = vpop.permute.xlu0 %529  ;;  %v523_v35 = vpop.permute.xlu1 %522 }
 0x245   : > { %536 = vst.msk [vmem:[#allocation2 + $0x10] sm:$0xf] %vm498_vm2, %v530_v34  ;;  %528 = vst.msk [vmem:[#allocation3 + $0xc] sm:$0xf] %vm498_vm2, %v523_v35 }
 0x248   : > { %v539_v36 = vpop.permute.xlu0 %538  ;;  %v532_v37 = vpop.permute.xlu1 %531 }
 0x249   : > { %545 = vst.msk [vmem:[#allocation3 + $0x10] sm:$0xf] %vm498_vm2, %v539_v36  ;;  %537 = vst.msk [vmem:[#allocation2 + $0x14] sm:$0xf] %vm498_vm2, %v532_v37 }
 0x24c   : > { %v548_v38 = vpop.permute.xlu0 %547  ;;  %v541_v39 = vpop.permute.xlu1 %540 }
 0x24d   : > { %554 = vst.msk [vmem:[#allocation2 + $0x18] sm:$0xf] %vm498_vm2, %v548_v38  ;;  %546 = vst.msk [vmem:[#allocation3 + $0x14] sm:$0xf] %vm498_vm2, %v541_v39 }
 0x250   : > { %v557_v40 = vpop.permute.xlu0 %556  ;;  %v550_v41 = vpop.permute.xlu1 %549 }
 0x251   : > { %563 = vst.msk [vmem:[#allocation3 + $0x18] sm:$0xf] %vm498_vm2, %v557_v40  ;;  %555 = vst.msk [vmem:[#allocation2 + $0x1c] sm:$0xf] %vm498_vm2, %v550_v41 }
 0x254   : > { %v559_v42 = vpop.permute.xlu1 %558 }
 0x255   : > { %564 = vst.msk [vmem:[#allocation3 + $0x1c] sm:$0xf] %vm498_vm2, %v559_v42 }
 0x256 PF: > { %v1329_v43 = vld [vmem:[#allocation12 + $0x8] sm:$0xff]   ;;  %s2072_s27 = sld [smem:[#allocation22_spill]]  ;;  %v1602_v44 = vmov 0.0   ;;  %v1330_v45 = vld [vmem:[#allocation12] sm:$0xff]   ;;  %vm1603_vm3 = vmmov 0   ;;  %vm593_vm4 = vcmask 261120   ;;  %v576_v47 = vlaneseq }
 0x257   : > { %1143 = vmatprep.subr.bf16.mxu0 %v1602_v44  ;;  %1147 = vmatprep.mubr.msk.bf16.mxu0 %vm1603_vm3, %v1602_v44  ;;  %v1907_v50 = vld [vmem:[%s312_s15] sm:$0xff]  ;;  %vm638_vm5 = vcmask 60416   ;;  %s1604_s18 = smov 104   ;;  %s1606_s14 = smov 112  }
 0x258   : > { %1144 = vmatpush3.bf16.msra.mxu0 %v1329_v43  ;;  %v577_v48 = vshrl.u32 %v576_v47, 7  ;;  %v659_v51 = vsub.f32 1.0, %v1907_v50  ;;  %s1917_s15 = smov 0  }
 0x259   : > { %1145 = vmatprep.subr.bf16.mxu0 %v1602_v44 }
 0x25a   : > { %v578_v49 = vsub.s32 0, %v577_v48  ;;  %v1910_v52 = vmul.f32 -10000.0, %v659_v51 }
 0x25c   : > { %s1079_s21 = sshll.u32 %s2072_s27, 3  ;;  %1146 = vmatpush3.bf16.msra.mxu0 %v1330_v45  ;;  %v579_v53 = vrot.slane %v1874_v0, %v578_v49 }
 0x25d   : > { %s566_s28 = sshra.s32 %s1079_s21, 3 }
 0x25e   : > { %s1080_s2 = sshll.u32 %s566_s28, 2 }
 0x25f   : > { %s569_s3 = scalar_lea.vmem %s303_s24, %s1080_s2 [#allocation7]  ;;  %s1605_s24 = smov 120  }
 0x260   : > { %v570_v46 = vld [vmem:[%s569_s3] sm:$0xf] }
 0x261   : > { %1148 = vmatmul.mubr.msk.bf16.vlgmr.msra.gmra.mxu0 %vm593_vm4, %v570_v46 }
 0x321   : > { %v631_v54 = vpop.f32.mrf.mxu0 }
 0x322   : > { %v632_v55 = vadd.f32 %v631_v54, %v579_v53 }
 0x323   : > { %v1149_v56 = vpop.f32.mrf.mxu0 }
 0x324   : > { %v637_v57 = vpack.c.bf16 %v632_v55, %v632_v55 }
 0x325   : > { %v634_v58 = vpop.f32.mrf.mxu0 }
 0x326   : > { %653 = vrot.lane.b32.xlu1 %v637_v57, %s1604_s18  ;;  %643 = vrot.lane.b32.xlu0 %v637_v57, %s1605_s24  ;;  %639 = vst.msk [vmem:[#allocation4] sm:$0xf] %vm638_vm5, %v637_v57 }
 0x327   : > { %v1150_v59 = vpop.f32.mrf.mxu0 }
 0x32a   : > { %648 = vrot.lane.b32.xlu0 %v637_v57, %s1606_s14 }
 0x398   : > { %v654_v60 = vpop.permute.xlu1 %653  ;;  %v644_v61 = vpop.permute.xlu0 %643 }
 0x399   : > { %657 = vst.msk [vmem:[#allocation4 + $0xc] sm:$0xf] %vm638_vm5, %v654_v60  ;;  %647 = vst.msk [vmem:[#allocation4 + $0x4] sm:$0xf] %vm638_vm5, %v644_v61 }
 0x39c   : > { %v649_v62 = vpop.permute.xlu0 %648 }
 0x39d   : > { %652 = vst.msk [vmem:[#allocation4 + $0x8] sm:$0xf] %vm638_vm5, %v649_v62 }
 0x39e LB: >> { %v1607_v63 = vmov 0.0   ;;  %vm1608_vm6 = vmmov 0   ;;  %s1109_s9 = sshll.u32 %s1587_s15, 3  ;;  %vm684_vm7 = vcmask 64512   ;;  %s1085_s16 = sshll.u32 %s1587_s15, 2  ;;  %vm733_vm8 = vcmask 130048   ;;  %s1587_s15 = sphi %s1917_s15, %s666_s15  }
 0x39f   : >> { %1151 = vmatprep.subr.bf16.mxu0 %v1607_v63  ;;  %1153 = vmatprep.mubr.msk.bf16.mxu0 %vm1608_vm6, %v1607_v63  ;;  %s672_s19 = scalar_lea.vmem [#allocation2], %s1109_s9  ;;  %s668_s20 = scalar_lea.vmem [#allocation4], %s1085_s16 }
 0x3a0   : >> { %1157 = vmatprep.subr.bf16.mxu1 %v1607_v63  ;;  %1159 = vmatprep.mubr.msk.bf16.mxu1 %vm1608_vm6, %v1607_v63  ;;  %v1331_v0 = vld [vmem:[%s672_s19] sm:$0xff]   ;;  %s676_s13 = scalar_lea.vmem [#allocation3], %s1109_s9  ;;  %s797_s8 = scalar_lea.vmem [#allocation5], %s1085_s16 }
 0x3a1   : >> { %v689_v1 = vsel %vm684_vm7, %v1331_v0, 0  ;;  %v1332_v15 = vld [vmem:[%s676_s13] sm:$0xff]   ;;  %s666_s15 = sadd.s32 1, %s1587_s15  }
 0x3a2   : >> { %1152 = vmatpush3.bf16.xpose.msra.mxu0 %v689_v1  ;;  %1158 = vmatpush3.bf16.msra.mxu1 %v1332_v15  ;;  %p663_p10 = scmp.ge.s32.totalorder %s666_s15, 4  }
 0x3a3   : > { %1163 = vmatprep.subr.bf16.mxu0 (%p663_p10), %v1602_v44  ;;  %s1609_s12 = smov (%p663_p10), 8   ;;  %s1610_s4 = smov (%p663_p10), 24   ;;  %v1337_v29 = vld [vmem:[#allocation13 + $0x8] sm:$0xff] (%p663_p10)   ;;  %v1338_v30 = vld [vmem:[#allocation13] sm:$0xff] (%p663_p10)   ;;  %vm807_vm9 = vcmask (%p663_p10), 126016   ;;  %vm815_vm10 = vcmask (%p663_p10), 191616  }
 0x3a4   : >> { %v669_v2 = vld [vmem:[%s668_s20] sm:$0xf]  ;;  %s1611_s5 = smov (%p663_p10), 16   ;;  %s2073_s27 = sld [smem:[#allocation23_spill]] (%p663_p10)  ;;  %vm823_vm11 = vcmask (%p663_p10), 257216  }
 0x3a5   : > { %s2074_s21 = sld [smem:[#allocation22_spill]] (%p663_p10)  ;;  %s909_s9 = sshll.u32 (%p663_p10), %s353_s11, 4  ;;  %s1955_s9 = int_to_ptr.vmem [resolvable:$true] %s909_s9 }
 0x3a6   : > { %s2075_s28 = sld [smem:[#allocation25_spill]] (%p663_p10) }
 0x3a7   : > { %s2076_s14 = sld [smem:[#allocation32_spill]] (%p663_p10) }
 0x3a8   : > { %s2077_s20 = sld [smem:[#allocation33_spill]] (%p663_p10) }
 0x3a9   : >> { %1154 = vmatmul.mubr.msk.bf16.vlgmr.msra.gmra.mxu0 %vm684_vm7, %v669_v2 }
 0x3aa   : > { %1167 = vmatprep.mubr.msk.bf16.mxu0 (%p663_p10), %vm1603_vm3, %v1602_v44  ;;  %1164 = vmatpush3.bf16.msra.mxu0 (%p663_p10), %v1337_v29  ;;  %s1099_s2 = sshll.u32 (%p663_p10), %s2073_s27, 1 }
 0x3ab   : > { %1165 = vmatprep.subr.bf16.mxu0 (%p663_p10), %v1602_v44  ;;  %s905_s3 = sadd.s32 (%p663_p10), %s2074_s21, %s1099_s2 }
 0x3ac   : > { %s1100_s15 = sshll.u32 (%p663_p10), %s905_s3, 7  ;;  %p2078_p8 = scmp.ne.s32.totalorder (%p663_p10), %s2075_s28, 0 }
 0x3ad   : > { %v1094_v35 = vld [vmem:[%s2076_s14] ss:$0 sm:$0xff] (%p663_p10) }
 0x3ae   : > { %1166 = vmatpush3.bf16.msra.mxu0 (%p663_p10), %v1338_v30  ;;  %s1953_s13 = scalar_lea.hbm (%p663_p10), %s2077_s20, %s1100_s15 }
 0x469   : >> { %v725_v3 = vpop.f32.mrf.mxu0 }
 0x46a   : >> { %v731_v4 = vmul.f32 %v725_v3, %v1907_v50 }
 0x46b   : >> { %v1155_v5 = vpop.f32.mrf.mxu0 }
 0x46c   : >> { %v732_v6 = vadd.f32 %v731_v4, %v1910_v52 }
 0x46d   : >> { %v728_v7 = vpop.f32.mrf.mxu0 }
 0x46e   : >> { %v734_v8 = vsel %vm733_vm8, %v732_v6, -inf }
 0x46f   : >> { %735 = vmax.xlane.f32.xlu0 %v734_v8  ;;  %v1156_v9 = vpop.f32.mrf.mxu0 }
 0x4f8   : >> { %v736_v10 = vpop.xlane.xlu0 %735 }
 0x4f9   : >> { %v737_v11 = vsub.f32 %v732_v6, %v736_v10 }
 0x4fb   : >> { %v738_v12 = vmul.f32 1.442695, %v737_v11 }
 0x4fd   : >> { %1333 = vpow2.f32 %v738_v12 }
 0x50a   : >> { %v1334_v13 = vpop.eup %1333 }
 0x50b   : >> { %v740_v14 = vsel %vm733_vm8, %v1334_v13, 0.0 }
 0x50c   : >> { %741 = vadd.xlane.f32.xlu0 %v740_v14 }
 0x595   : >> { %v742_v16 = vpop.xlane.xlu0 %741 }
 0x596   : >> { %1335 = vrcp.f32 %v742_v16 }
 0x5a3   : >> { %v1336_v17 = vpop.eup %1335 }
 0x5a4   : >> { %v744_v18 = vmul.f32 %v1336_v17, %v1334_v13 }
 0x5a6   : >> { %v745_v19 = vpack.c.bf16 %v744_v18, %v744_v18 }
 0x5a8   : >> { %1160 = vmatmul.mubr.msk.bf16.vlgmr.msra.gmra.mxu1 %vm733_vm8, %v745_v19 }
 0x668   : >> { %v789_v20 = vpop.f32.mrf.mxu1 }
 0x669   : >> { %v795_v21 = vpack.c.bf16 %v789_v20, %v789_v20 }
 0x66a   : >> { %v1161_v22 = vpop.f32.mrf.mxu1  ;;  %665 = sbr.rel (!%p663_p10) target bundleno = 926 (0x39e), region = 138 }
 0x66b   : >> { %798 = vst.msk [vmem:[%s797_s8] sm:$0xf] %vm638_vm5, %v795_v21  ;;  %s894_s8 = scalar_lea.sflag (%p663_p10), [#allocation9], %s310_s10 }
 0x66c   : >> { %v792_v23 = vpop.f32.mrf.mxu1 }
 0x66e   : >> { %v1162_v24 = vpop.f32.mrf.mxu1 }
 0x672   : > { %v802_v25 = vld [vmem:[#allocation5 + $0x4] sm:$0xf]  ;;  %v810_v26 = vld [vmem:[#allocation5 + $0x8] sm:$0xf]  ;;  %v818_v27 = vld [vmem:[#allocation5 + $0xc] sm:$0xf] }
 0x673   : > { %804 = vrot.lane.b32.xlu0 %v802_v25, %s1609_s12  ;;  %v799_v28 = vld [vmem:[#allocation5] sm:$0xf]  ;;  %820 = vrot.lane.b32.xlu1 %v818_v27, %s1610_s4  ;;  %s1447_s12 = scalar_lea.vmem %s1955_s9, 128  ;;  %s1612_s4 = smov [#allocation15]  }
 0x674   : > { %800 = vst.msk [vmem:[#allocation6] sm:$0xf] %vm638_vm5, %v799_v28  ;;  %p1448_p4 = scmp.ne.s32.totalorder %s1955_s9, %s1447_s12 }
 0x676   : > { %p1449_p12 = pnand %p1448_p4, %p2078_p8 }
 0x677   : > { %812 = vrot.lane.b32.xlu0 %v810_v26, %s1611_s5  ;;  %s1451_s5 = sshll.u32 %s1612_s4, 4  ;;  %s1452_s5 = int_to_ptr.vmem [resolvable:$false] %s1451_s5 }
 0x678   : > { %p1450_p13 = pneg %p1449_p12  ;;  %s1453_s27 = scalar_lea.vmem %s1452_s5, 256 }
 0x679   : > { %p1454_p3 = scmp.lt.s32.totalorder %s1955_s9, %s1452_s5  ;;  %p1455_p9 = scmp.lt.s32.totalorder %s1453_s27, %s1447_s12 }
 0x67b   : > { %p1456_p2 = por %p1455_p9, %p1454_p3 }
 0x67d   : > { %p1457_p1 = pnand %p1456_p2, %p1450_p13 }
 0x6e5   : > { %v805_v31 = vpop.permute.xlu0 %804  ;;  %v821_v32 = vpop.permute.xlu1 %820 }
 0x6e6   : > { %808 = vst.msk [vmem:[#allocation6] sm:$0xf] %vm807_vm9, %v805_v31 }
 0x6e9   : > { %v813_v33 = vpop.permute.xlu0 %812 }
 0x6ea   : > { %816 = vst.msk [vmem:[#allocation6] sm:$0xf] %vm815_vm10, %v813_v33 }
 0x6eb   : > { %824 = vst.msk [vmem:[#allocation6] sm:$0xf] %vm823_vm11, %v821_v32 }
 0x6f2   : > { %v825_v34 = vld [vmem:[#allocation6] sm:$0xf] }
 0x6f3   : > { %1168 = vmatmul.mubr.msk.bf16.vlgmr.msra.gmra.mxu0 %vm593_vm4, %v825_v34 }
 0x7b3   : > { %v886_v36 = vpop.f32.mrf.mxu0 }
 0x7b4   : > { %v887_v37 = vadd.f32 %v1094_v35, %v886_v36 }
 0x7b5   : > { %v1169_v38 = vpop.f32.mrf.mxu0 }
 0x7b6   : > { %892 = vst.msk [vmem:[%s353_s11] sm:$0xff] %vm593_vm4, %v887_v37 }
 0x7b7   : > { %v889_v39 = vpop.f32.mrf.mxu0 }
 0x7b8   : > { %1460 = shalt.err (!%p1457_p1)
}
 0x7b9   : > { %s1461_s6 = scalar_lea.hbm %s1953_s13, 128  ;;  %s1465_s21 = scalar_lea.hbm %s2077_s20, 512 }
 0x7ba   : > { %p1462_p6 = scmp.ne.s32.totalorder %s1953_s13, %s1461_s6  ;;  %p1466_p11 = scmp.lt.s32.totalorder %s1953_s13, %s2077_s20 }
 0x7bb   : > { %p1467_p0 = scmp.lt.s32.totalorder %s1465_s21, %s1461_s6 }
 0x7bc   : > { %p1463_p5 = pnand %p1462_p6, %p2078_p8 }
 0x7bd   : > { %p1468_p10 = por %p1467_p0, %p1466_p11 }
 0x7be   : > { %p1464_p7 = pneg %p1463_p5 }
 0x7c0   : > { %p1469_p4 = pnand %p1468_p10, %p1464_p7 }
 0x7c2   : > { %1472 = shalt.err (!%p1469_p4)
}
 0x7c3   : > { %1183 = dma.vmem_to_hbm [thread:$0]  (%p2078_p8), %s1955_s9, 128, %s1953_s13, %s894_s8   ;;  %v1170_v40 = vpop.f32.mrf.mxu0 }
 0x7c4 PF: > { %s2079_s18 = sld [smem:[#allocation21_spill]]  ;;  %p1208_p12 = scmp.ge.s32.totalorder %s1583_s7, 2 }
 0x7c5   : > { %s2080_s24 = sld [smem:[#allocation27_spill]] }
 0x7ca   : > { %s921_s14 = sand.u32 1, %s2079_s18  }
 0x7cb   : > { %p2081_p13 = scmp.ne.s32.totalorder %s2080_s24, 0  ;;  %s922_s15 = scalar_lea.sflag [#allocation9], %s921_s14 }
 0x7cd   : > { %p1200_p3 = pnand %p1208_p12, %p2081_p13 }
 0x7cf   : > { %p1201_p9 = pneg %p1200_p3 }
 0x7d1   : > { %1538 = dma.done.wait (%p1201_p9), %s922_s15, 128  }
 0x7d2   : > { %1540 = vsyncadd (%p1201_p9), %s922_s15, 4294967168  ;;  %s26_s7 = sadd.s32 1, %s1583_s7   ;;  %s2082_s9 = sld [smem:[#allocation24_spill]] }
 0x7d3   : > { %p23_p2 = scmp.ge.s32.totalorder %s26_s7, 6   ;;  %s2083_s19 = sld [smem:[#allocation26_spill]] }
 0x7d4   : > { %s2084_s21 = smov %s1547_s22  ;;  %s2085_s22 = smov %s1551_s23 }
 0x7d5   : > { %s2086_s23 = smov %s1822_s0  ;;  %s2087_s24 = smov %s1559_s25 }
 0x7d6   : > { %s2088_s25 = smov %s1563_s26  ;;  %s2089_s26 = smov %s1819_s17 }
 0x7d7   : > { %s2090_s27 = smov %s1575_s29  ;;  %s2091_s28 = smov %s1579_s30 }
 0x7d8   : > { %s2092_s29 = smov %s2082_s9  ;;  %25 = sbr.rel (!%p23_p2) target bundleno = 19 (0x13), region = 149 }
 0x7d9   : > { %s2093_s30 = smov %s2083_s19 }
 0x7dd   :  { %927 = vsyncpa [#allocation8], 1 }
 0x7de   :  { %929 = vsyncpa [#allocation8 + $0x1], 1 }
 0x7df   :  { %930 = vsyncpa [#allocation11], 1 }
 0x7e0   :  { %932 = vsyncpa [#allocation11 + $0x1], 1 }
 0x7e1   :  { %933 = vsyncpa [#allocation14], 1 }
 0x7e2   :  { %934 = vsyncpa [#allocation9], 1 }
 0x7e3   :  { %936 = vsyncpa [#allocation9 + $0x1], 1 }

</bundles_post_ra>
